<compile_context>
chip_gen: v7x
topology: tpu7x:2x2x1
jax: 0.10.0
libtpu: 0.0.40
codegen_flags: <defaults>
</compile_context>

<pallas_src>
import jax
import jax.numpy as jnp
from jax.experimental import pallas as pl
from jax.experimental.pallas import tpu as pltpu


def _round_up(x, m):
    return ((x + m - 1) // m) * m


def _pick_c_tile(C, c_tile_hint):
    """Largest divisor of C that is <= hint and a multiple of 8 (else C)."""
    t0 = min(c_tile_hint, C)
    for t in range(t0, 7, -1):
        if C % t == 0 and t % 8 == 0:
            return t
    return C


# ----------------------------------------------------------------------------
# Fused kernel: context combine + 3x3 conv (C -> 1) + flatten.
# Grid = (batch, channel-tile).  Scratch taps_ref accumulates the 9 tap planes
# (channel-contracted) with a zero halo along the flattened pixel axis.
# ----------------------------------------------------------------------------
def _make_level_kernel(n_ctx, use_pyr, H, W, HALO):
    HW = H * W

    def kernel(*refs):
        w_ref, b_ref = refs[0], refs[1]
        idx = 2
        if use_pyr:
            pyr_ref = refs[idx]
            idx += 1
        ctx_refs = refs[idx:idx + 2 * n_ctx]
        out_ref = refs[idx + 2 * n_ctx]
        taps_ref = refs[idx + 2 * n_ctx + 1]

        c = pl.program_id(1)

        # ---- context combine for this channel tile (bf16 -> f32 VPU) ------
        if use_pyr:
            f = pyr_ref[0].astype(jnp.float32)                    # (Ct, HW)
            j0 = 0
        else:
            f = (ctx_refs[0][0].astype(jnp.float32)
                 * ctx_refs[1][0].astype(jnp.float32))
            j0 = 1
        for j in range(j0, n_ctx):
            f = f + (ctx_refs[2 * j][0].astype(jnp.float32)
                     * ctx_refs[2 * j + 1][0].astype(jnp.float32))

        # ---- partial channel contraction of all 9 taps: ONE MXU matmul ----
        partial = jnp.dot(w_ref[0], f,
                          preferred_element_type=jnp.float32)     # (9, HW)

        @pl.when(c == 0)
        def _():
            taps_ref[...] = jnp.zeros_like(taps_ref)   # zeros halo + middle

        taps_ref[:, HALO:HALO + HW] = taps_ref[:, HALO:HALO + HW] + partial

        # ---- last channel tile: shift-accumulate 9 taps, bias, store ------
        @pl.when(c == pl.num_programs(1) - 1)
        def _():
            taps = taps_ref[...]                                  # (9, HWP2)

            def tap(kh, kw):
                off = HALO + (kh - 1) * W + (kw - 1)
                k = kh * 3 + kw
                return taps[k:k + 1, off:off + HW]                # (1, HW)

            # Vertical out-of-image taps are already zero via the halo; only
            # horizontal (column) wrap-around needs masking.  Taps sharing a
            # kw share the mask -> fold to 2 selects.
            center = tap(0, 1) + tap(1, 1) + tap(2, 1)
            left = tap(0, 0) + tap(1, 0) + tap(2, 0)     # reads x-1
            right = tap(0, 2) + tap(1, 2) + tap(2, 2)    # reads x+1
            col = jax.lax.broadcasted_iota(jnp.int32, (1, HW), 1) % W
            acc = (b_ref[0, 0] + center
                   + jnp.where(col >= 1, left, 0.0)
                   + jnp.where(col <= W - 2, right, 0.0))
            out_ref[...] = acc.reshape(1, 1, HW)

    return kernel


def _fused_level_conv(pyr_nchw, fp_list, mask_list, w9c, bias, *,
                      use_pyramid_ft=True, feature_dtype=jnp.bfloat16,
                      c_tile=128):
    """(pyramid + sum fp*mask) -> Conv2d(C,1,3,s=1,p=1) -> (N, H*W) scores."""
    N, C, H, W = pyr_nchw.shape
    HW = H * W
    n_ctx = len(fp_list)
    use_pyr = use_pyramid_ft or n_ctx == 0

    C_TILE = _pick_c_tile(C, c_tile)
    KC = C // C_TILE
    HALO = _round_up(W + 1, 128)           # lane-aligned flat-index halo
    HWP2 = HW + 2 * HALO

    flat = lambda x: x.reshape(N, C, HW).astype(feature_dtype)

    # Channel-tiled weights (KC, 9, C_TILE): block dims equal full dims, so
    # any C_TILE is layout-legal.
    w_tiled = (w9c.astype(jnp.float32)
               .reshape(9, KC, C_TILE).transpose(1, 0, 2))

    feat_spec = pl.BlockSpec((1, C_TILE, HW), lambda n, c: (n, c, 0))
    in_specs = [pl.BlockSpec((1, 9, C_TILE), lambda n, c: (c, 0, 0)),
                pl.BlockSpec(memory_space=pltpu.MemorySpace.SMEM)]
    args = [w_tiled, bias.reshape(1, 1).astype(jnp.float32)]
    if use_pyr:
        in_specs.append(feat_spec)
        args.append(flat(pyr_nchw))
    for fp, mk in zip(fp_list, mask_list):
        in_specs += [feat_spec, feat_spec]
        args += [flat(fp), flat(mk)]

    # Explicit scoped-VMEM limit (scaled to the actual block footprint with a
    # generous margin, capped well under physical VMEM on all generations).
    feat_bytes = C_TILE * HW * jnp.dtype(feature_dtype).itemsize
    n_feat = (1 if use_pyr else 0) + 2 * n_ctx
    vmem_est = (2 * n_feat * feat_bytes + 2 * 9 * C_TILE * 4
                + 9 * HWP2 * 4 + 2 * HW * 4)
    vmem_limit = int(min(max(4 * vmem_est, 8 << 20), 96 << 20))

    out = pl.pallas_call(
        _make_level_kernel(n_ctx, use_pyr, H, W, HALO),
        out_shape=jax.ShapeDtypeStruct((N, 1, HW), jnp.float32),
        grid=(N, KC),
        in_specs=in_specs,
        out_specs=pl.BlockSpec((1, 1, HW), lambda n, c: (n, 0, 0)),
        scratch_shapes=[pltpu.VMEM((9, HWP2), jnp.float32)],
        compiler_params=pltpu.CompilerParams(
            dimension_semantics=("parallel", "arbitrary"),
            vmem_limit_bytes=vmem_limit),
    )(*args)
    return out.reshape(N, HW)


# ----------------------------------------------------------------------------
# Module forward (num_anchor_per_pixel=1, num_classes=1).
# ----------------------------------------------------------------------------
def retina_pred_net_forward(pyramid_feats, fp_context_fts, mask_fp_context_fts,
                            weights, biases, phase="training",
                            use_pyramid_ft=True, feature_dtype=jnp.bfloat16,
                            c_tile=128):
    # Context levels, then the last two pyramid levels (no context), as in
    # the PyTorch module.
    levels = [(pyramid_feats[i], fp_context_fts[i], mask_fp_context_fts[i])
              for i in range(len(fp_context_fts))]
    levels.append((pyramid_feats[-2], [], []))
    levels.append((pyramid_feats[-1], [], []))

    conf = []
    for (pyr, fps, mks), w, b in zip(levels, weights, biases):
        conf.append(_fused_level_conv(pyr, fps, mks, w, b,
                                      use_pyramid_ft=use_pyramid_ft,
                                      feature_dtype=feature_dtype,
                                      c_tile=c_tile))
    conf = jnp.concatenate(conf, axis=1)[..., None]        # (N, sum(HW), 1)

    if phase == "training":
        return conf
    return jax.nn.sigmoid(conf)


# ----------------------------------------------------------------------------
# Pure-JAX reference (for correctness check).  Uses the same bf16-rounded
# feature values the kernel sees, but full-precision f32 math.
# ----------------------------------------------------------------------------
def _reference_forward(pyramid_feats, fp_context_fts, mask_fp_context_fts,
                       weights, biases, use_pyramid_ft=True,
                       feature_dtype=jnp.bfloat16):
    q = lambda x: x.astype(feature_dtype).astype(jnp.float32)
    feats = []
    for i in range(len(fp_context_fts)):
        f = None
        for j in range(len(fp_context_fts[i])):
            t = q(fp_context_fts[i][j]) * q(mask_fp_context_fts[i][j])
            f = t if f is None else f + t
        if use_pyramid_ft:
            f = f + q(pyramid_feats[i])
        feats.append(f)
    feats.append(q(pyramid_feats[-2]))
    feats.append(q(pyramid_feats[-1]))

    outs = []
    for x, w, b in zip(feats, weights, biases):
        N, C, H, W = x.shape
        xp = jnp.pad(x, ((0, 0), (0, 0), (1, 1), (1, 1)))
        acc = jnp.zeros((N, H, W), jnp.float32)
        for kh in range(3):
            for kw in range(3):
                patch = xp[:, :, kh:kh + H, kw:kw + W]
                acc = acc + jnp.einsum('nchw,c->nhw', patch, w[kh * 3 + kw],
                                       precision=jax.lax.Precision.HIGHEST)
        outs.append((acc + b[0]).reshape(N, H * W))
    return jnp.concatenate(outs, axis=1)[..., None]


if __name__ == "__main__":
    key = jax.random.PRNGKey(0)
    keys = iter(jax.random.split(key, 64))

    N, C = 2, 32                       # batch, channels (scaled from 256)
    sizes = [16, 8, 8, 8, 4, 4]        # 6 pyramid levels (H == W)
    n_ctx_levels = 4                   # context levels; +2 pyramid tails = 6
    J = 2                              # context features per level

    pyramid = [jax.random.normal(next(keys), (N, C, s, s), jnp.float32)
               for s in sizes]
    fp_ctx = [[jax.random.normal(next(keys), (N, C, sizes[i], sizes[i]),
                                 jnp.float32) for _ in range(J)]
              for i in range(n_ctx_levels)]
    mask_ctx = [[jax.random.uniform(next(keys), (N, C, sizes[i], sizes[i]),
                                    jnp.float32) for _ in range(J)]
                for i in range(n_ctx_levels)]

    # Tap-major conv weights (9, C).  To port a real PyTorch Conv2d(C,1,3,3)
    # weight w of shape (1, C, 3, 3): jnp.transpose(w[0], (1, 2, 0)).reshape(9, C).
    weights = [jax.random.normal(next(keys), (9, C), jnp.float32) * 0.05
               for _ in range(6)]
    biases = [jnp.full((1,), 0.01 * (k + 1), jnp.float32) for k in range(6)]

    expected_anchors = sum(s * s for s in sizes)

    # --- training phase, use_pyramid_ft=True -------------------------------
    out = retina_pred_net_forward(pyramid, fp_ctx, mask_ctx, weights, biases,
                                  phase="training", use_pyramid_ft=True)
    out = jax.block_until_ready(out)
    assert out.shape == (N, expected_anchors, 1), out.shape
    assert out.dtype == jnp.float32

    ref = _reference_forward(pyramid, fp_ctx, mask_ctx, weights, biases,
                             use_pyramid_ft=True)
    max_err = float(jnp.max(jnp.abs(out - ref)))
    assert max_err < 1e-2, f"max abs error {max_err}"

    # --- use_pyramid_ft=False on context levels (pyramid DMA skipped) ------
    out2 = retina_pred_net_forward(pyramid, fp_ctx, mask_ctx, weights, biases,
                                   phase="training", use_pyramid_ft=False)
    out2 = jax.block_until_ready(out2)
    ref2 = _reference_forward(pyramid, fp_ctx, mask_ctx, weights, biases,
                              use_pyramid_ft=False)
    max_err2 = float(jnp.max(jnp.abs(out2 - ref2)))
    assert max_err2 < 1e-2, f"max abs error {max_err2}"

    print("KERNEL_OK")
</pallas_src>

<mosaic_0001>
module attributes {stable_mosaic.version = 11 : i64} {
  func.func @kernel(%arg0: i32, %arg1: i32, %arg2: memref<1x9x32xf32, #tpu.memory_space<vmem>>, %arg3: memref<1x1xf32, #tpu.memory_space<smem>>, %arg4: memref<1x32x256xbf16, #tpu.memory_space<vmem>>, %arg5: memref<1x32x256xbf16, #tpu.memory_space<vmem>>, %arg6: memref<1x32x256xbf16, #tpu.memory_space<vmem>>, %arg7: memref<1x32x256xbf16, #tpu.memory_space<vmem>>, %arg8: memref<1x32x256xbf16, #tpu.memory_space<vmem>>, %arg9: memref<1x1x256xf32, #tpu.memory_space<vmem>>, %arg10: memref<9x512xf32, #tpu.memory_space<vmem>>) attributes {dimension_semantics = [#tpu.dimension_semantics<parallel>, #tpu.dimension_semantics<arbitrary>], iteration_bounds = array<i64: 2, 1>, scalar_prefetch = 0 : i64, scratch_operands = 1 : i64, tpu.core_type = #tpu.core_type<tc>, window_params = [{transform_indices = @transform_0, window_bounds = array<i64: 1, 9, 32>}, {transform_indices = @transform_1, window_bounds = array<i64: 1, 1>}, {transform_indices = @transform_2, window_bounds = array<i64: 1, 32, 256>}, {transform_indices = @transform_3, window_bounds = array<i64: 1, 32, 256>}, {transform_indices = @transform_4, window_bounds = array<i64: 1, 32, 256>}, {transform_indices = @transform_5, window_bounds = array<i64: 1, 32, 256>}, {transform_indices = @transform_6, window_bounds = array<i64: 1, 32, 256>}, {transform_indices = @transform_7, window_bounds = array<i64: 1, 1, 256>}]} {
    %c0 = arith.constant 0 : index
    %c0_0 = arith.constant 0 : index
    %c0_1 = arith.constant 0 : index
    %0 = vector.load %arg4[%c0, %c0_0, %c0_1] : memref<1x32x256xbf16, #tpu.memory_space<vmem>>, vector<1x32x256xbf16>
    %1 = vector.shape_cast %0 : vector<1x32x256xbf16> to vector<32x256xbf16>
    %2 = arith.extf %1 : vector<32x256xbf16> to vector<32x256xf32>
    %c0_2 = arith.constant 0 : index
    %c0_3 = arith.constant 0 : index
    %c0_4 = arith.constant 0 : index
    %3 = vector.load %arg5[%c0_2, %c0_3, %c0_4] : memref<1x32x256xbf16, #tpu.memory_space<vmem>>, vector<1x32x256xbf16>
    %4 = vector.shape_cast %3 : vector<1x32x256xbf16> to vector<32x256xbf16>
    %5 = arith.extf %4 : vector<32x256xbf16> to vector<32x256xf32>
    %c0_5 = arith.constant 0 : index
    %c0_6 = arith.constant 0 : index
    %c0_7 = arith.constant 0 : index
    %6 = vector.load %arg6[%c0_5, %c0_6, %c0_7] : memref<1x32x256xbf16, #tpu.memory_space<vmem>>, vector<1x32x256xbf16>
    %7 = vector.shape_cast %6 : vector<1x32x256xbf16> to vector<32x256xbf16>
    %8 = arith.extf %7 : vector<32x256xbf16> to vector<32x256xf32>
    %9 = arith.mulf %5, %8 : vector<32x256xf32>
    %10 = arith.addf %2, %9 : vector<32x256xf32>
    %c0_8 = arith.constant 0 : index
    %c0_9 = arith.constant 0 : index
    %c0_10 = arith.constant 0 : index
    %11 = vector.load %arg7[%c0_8, %c0_9, %c0_10] : memref<1x32x256xbf16, #tpu.memory_space<vmem>>, vector<1x32x256xbf16>
    %12 = vector.shape_cast %11 : vector<1x32x256xbf16> to vector<32x256xbf16>
    %13 = arith.extf %12 : vector<32x256xbf16> to vector<32x256xf32>
    %c0_11 = arith.constant 0 : index
    %c0_12 = arith.constant 0 : index
    %c0_13 = arith.constant 0 : index
    %14 = vector.load %arg8[%c0_11, %c0_12, %c0_13] : memref<1x32x256xbf16, #tpu.memory_space<vmem>>, vector<1x32x256xbf16>
    %15 = vector.shape_cast %14 : vector<1x32x256xbf16> to vector<32x256xbf16>
    %16 = arith.extf %15 : vector<32x256xbf16> to vector<32x256xf32>
    %17 = arith.mulf %13, %16 : vector<32x256xf32>
    %18 = arith.addf %10, %17 : vector<32x256xf32>
    %c0_14 = arith.constant 0 : index
    %c0_15 = arith.constant 0 : index
    %c0_16 = arith.constant 0 : index
    %19 = vector.load %arg2[%c0_14, %c0_15, %c0_16] : memref<1x9x32xf32, #tpu.memory_space<vmem>>, vector<1x9x32xf32>
    %20 = vector.shape_cast %19 : vector<1x9x32xf32> to vector<9x32xf32>
    %cst = arith.constant dense<0.000000e+00> : vector<9x256xf32>
    %21 = tpu.matmul %20, %18, %cst {dimension_numbers = #tpu.dot_dimension_numbers<[1], [0], [0], [1], [0, 0, 1, 1], [], []>} : vector<9x32xf32>, vector<32x256xf32>, vector<9x256xf32> -> vector<9x256xf32>
    %c0_i32 = arith.constant 0 : i32
    %22 = arith.cmpi eq, %arg1, %c0_i32 : i32
    %23 = arith.extui %22 : i1 to i32
    %c0_i32_17 = arith.constant 0 : i32
    %24 = arith.cmpi ne, %23, %c0_i32_17 : i32
    scf.if %24 {
      %cst_23 = arith.constant 0.000000e+00 : f32
      %31 = vector.broadcast %cst_23 : f32 to vector<9x512xf32>
      %c0_24 = arith.constant 0 : index
      %c0_25 = arith.constant 0 : index
      %32 = vector.load %arg10[%c0_24, %c0_25] : memref<9x512xf32, #tpu.memory_space<vmem>>, vector<9x512xf32>
      tpu.vector_store %arg10[%c0_24, %c0_25], %31 {strides = array<i32>} : memref<9x512xf32, #tpu.memory_space<vmem>>, vector<9x512xf32>,
    } else {
    }
    %c0_18 = arith.constant 0 : index
    %c128 = arith.constant 128 : index
    %25 = vector.load %arg10[%c0_18, %c128] : memref<9x512xf32, #tpu.memory_space<vmem>>, vector<9x256xf32>
    %26 = arith.addf %25, %21 : vector<9x256xf32>
    %c0_19 = arith.constant 0 : index
    %c128_20 = arith.constant 128 : index
    %27 = vector.load %arg10[%c0_19, %c128_20] : memref<9x512xf32, #tpu.memory_space<vmem>>, vector<9x256xf32>
    tpu.vector_store %arg10[%c0_19, %c128_20], %26 {strides = array<i32>} : memref<9x512xf32, #tpu.memory_space<vmem>>, vector<9x256xf32>,
    %c0_i32_21 = arith.constant 0 : i32
    %28 = arith.cmpi eq, %arg1, %c0_i32_21 : i32
    %29 = arith.extui %28 : i1 to i32
    %c0_i32_22 = arith.constant 0 : i32
    %30 = arith.cmpi ne, %29, %c0_i32_22 : i32
    scf.if %30 {
      %c0_23 = arith.constant 0 : index
      %c0_24 = arith.constant 0 : index
      %31 = vector.load %arg10[%c0_23, %c0_24] : memref<9x512xf32, #tpu.memory_space<vmem>>, vector<9x512xf32>
      %32 = vector.extract_strided_slice %31 {offsets = [1, 112], sizes = [1, 256], strides = [1, 1]} : vector<9x512xf32> to vector<1x256xf32>
      %33 = vector.extract_strided_slice %31 {offsets = [4, 128], sizes = [1, 256], strides = [1, 1]} : vector<9x512xf32> to vector<1x256xf32>
      %34 = arith.addf %32, %33 : vector<1x256xf32>
      %35 = vector.extract_strided_slice %31 {offsets = [7, 144], sizes = [1, 256], strides = [1, 1]} : vector<9x512xf32> to vector<1x256xf32>
      %36 = arith.addf %34, %35 : vector<1x256xf32>
      %37 = vector.extract_strided_slice %31 {offsets = [0, 111], sizes = [1, 256], strides = [1, 1]} : vector<9x512xf32> to vector<1x256xf32>
      %38 = vector.extract_strided_slice %31 {offsets = [3, 127], sizes = [1, 256], strides = [1, 1]} : vector<9x512xf32> to vector<1x256xf32>
      %39 = arith.addf %37, %38 : vector<1x256xf32>
      %40 = vector.extract_strided_slice %31 {offsets = [6, 143], sizes = [1, 256], strides = [1, 1]} : vector<9x512xf32> to vector<1x256xf32>
      %41 = arith.addf %39, %40 : vector<1x256xf32>
      %42 = vector.extract_strided_slice %31 {offsets = [2, 113], sizes = [1, 256], strides = [1, 1]} : vector<9x512xf32> to vector<1x256xf32>
      %43 = vector.extract_strided_slice %31 {offsets = [5, 129], sizes = [1, 256], strides = [1, 1]} : vector<9x512xf32> to vector<1x256xf32>
      %44 = arith.addf %42, %43 : vector<1x256xf32>
      %45 = vector.extract_strided_slice %31 {offsets = [8, 145], sizes = [1, 256], strides = [1, 1]} : vector<9x512xf32> to vector<1x256xf32>
      %46 = arith.addf %44, %45 : vector<1x256xf32>
      %47 = tpu.iota {dimensions = array<i32: 1>} : vector<1x256xi32>
      %c16_i32 = arith.constant 16 : i32
      %c0_i32_25 = arith.constant 0 : i32
      %48 = arith.cmpi eq, %c16_i32, %c0_i32_25 : i32
      %c1_i32 = arith.constant 1 : i32
      %49 = arith.select %48, %c1_i32, %c16_i32 : i32
      %50 = vector.broadcast %49 : i32 to vector<1x256xi32>
      %51 = arith.remsi %47, %50 : vector<1x256xi32>
      %c0_i32_26 = arith.constant 0 : i32
      %52 = vector.broadcast %c0_i32_26 : i32 to vector<1x256xi32>
      %53 = arith.cmpi ne, %51, %52 : vector<1x256xi32>
      %c0_i32_27 = arith.constant 0 : i32
      %54 = vector.broadcast %c0_i32_27 : i32 to vector<1x256xi32>
      %55 = arith.cmpi slt, %51, %54 : vector<1x256xi32>
      %c0_i32_28 = arith.constant 0 : i32
      %56 = arith.cmpi slt, %49, %c0_i32_28 : i32
      %57 = vector.broadcast %56 : i1 to vector<1x256xi1>
      %58 = vector.broadcast %57 : vector<1x256xi1> to vector<1x256xi1>
      %59 = arith.xori %55, %58 : vector<1x256xi1>
      %60 = arith.andi %59, %53 : vector<1x256xi1>
      %61 = vector.broadcast %49 : i32 to vector<1x256xi32>
      %62 = arith.addi %51, %61 : vector<1x256xi32>
      %63 = arith.select %60, %62, %51 : vector<1x256xi1>, vector<1x256xi32>
      %c0_29 = arith.constant 0 : index
      %c0_30 = arith.constant 0 : index
      %64 = memref.load %arg3[%c0_29, %c0_30] : memref<1x1xf32, #tpu.memory_space<smem>>
      %65 = vector.broadcast %64 : f32 to vector<1x256xf32>
      %66 = arith.addf %65, %36 : vector<1x256xf32>
      %c1_i32_31 = arith.constant 1 : i32
      %67 = vector.broadcast %c1_i32_31 : i32 to vector<1x256xi32>
      %68 = arith.cmpi sge, %63, %67 : vector<1x256xi32>
      %cst_32 = arith.constant 0.000000e+00 : f32
      %69 = vector.broadcast %cst_32 : f32 to vector<1x256xf32>
      %70 = arith.select %68, %41, %69 : vector<1x256xi1>, vector<1x256xf32>
      %71 = arith.addf %66, %70 : vector<1x256xf32>
      %c14_i32 = arith.constant 14 : i32
      %72 = vector.broadcast %c14_i32 : i32 to vector<1x256xi32>
      %73 = arith.cmpi sle, %63, %72 : vector<1x256xi32>
      %cst_33 = arith.constant 0.000000e+00 : f32
      %74 = vector.broadcast %cst_33 : f32 to vector<1x256xf32>
      %75 = arith.select %73, %46, %74 : vector<1x256xi1>, vector<1x256xf32>
      %76 = arith.addf %71, %75 : vector<1x256xf32>
      %77 = vector.shape_cast %76 : vector<1x256xf32> to vector<1x1x256xf32>
      %c0_34 = arith.constant 0 : index
      %c0_35 = arith.constant 0 : index
      %c0_36 = arith.constant 0 : index
      %78 = vector.load %arg9[%c0_34, %c0_35, %c0_36] : memref<1x1x256xf32, #tpu.memory_space<vmem>>, vector<1x1x256xf32>
      tpu.vector_store %arg9[%c0_34, %c0_35, %c0_36], %77 {strides = array<i32>} : memref<1x1x256xf32, #tpu.memory_space<vmem>>, vector<1x1x256xf32>,
    } else {
    }
    return
  }
  func.func @transform_0(%arg0: i32, %arg1: i32) -> (i32, i32, i32) {
    %c0_i32 = arith.constant 0 : i32
    %c0_i32_0 = arith.constant 0 : i32
    %c0_i32_1 = arith.constant 0 : i32
    return %arg1, %c0_i32, %c0_i32_0 : i32, i32, i32
  }
  func.func @transform_1(%arg0: i32, %arg1: i32) -> (i32, i32) {
    %c0_i32 = arith.constant 0 : i32
    %c0_i32_0 = arith.constant 0 : i32
    %c0_i32_1 = arith.constant 0 : i32
    return %c0_i32, %c0_i32_0 : i32, i32
  }
  func.func @transform_2(%arg0: i32, %arg1: i32) -> (i32, i32, i32) {
    %c0_i32 = arith.constant 0 : i32
    %c0_i32_0 = arith.constant 0 : i32
    return %arg0, %arg1, %c0_i32 : i32, i32, i32
  }
  func.func @transform_3(%arg0: i32, %arg1: i32) -> (i32, i32, i32) {
    %c0_i32 = arith.constant 0 : i32
    %c0_i32_0 = arith.constant 0 : i32
    return %arg0, %arg1, %c0_i32 : i32, i32, i32
  }
  func.func @transform_4(%arg0: i32, %arg1: i32) -> (i32, i32, i32) {
    %c0_i32 = arith.constant 0 : i32
    %c0_i32_0 = arith.constant 0 : i32
    return %arg0, %arg1, %c0_i32 : i32, i32, i32
  }
  func.func @transform_5(%arg0: i32, %arg1: i32) -> (i32, i32, i32) {
    %c0_i32 = arith.constant 0 : i32
    %c0_i32_0 = arith.constant 0 : i32
    return %arg0, %arg1, %c0_i32 : i32, i32, i32
  }
  func.func @transform_6(%arg0: i32, %arg1: i32) -> (i32, i32, i32) {
    %c0_i32 = arith.constant 0 : i32
    %c0_i32_0 = arith.constant 0 : i32
    return %arg0, %arg1, %c0_i32 : i32, i32, i32
  }
  func.func @transform_7(%arg0: i32, %arg1: i32) -> (i32, i32, i32) {
    %c0_i32 = arith.constant 0 : i32
    %c0_i32_0 = arith.constant 0 : i32
    %c0_i32_1 = arith.constant 0 : i32
    return %arg0, %c0_i32, %c0_i32_0 : i32, i32, i32
  }
}

</mosaic_0001>

<bundles_post_ra>
// kernel: tpu_custom_call.1
= control target key start
LH: loop header
LB: loop body
LE: loop exit
PB: predicated region body
PF: predicated region fallthrough
CT: control target
= control target key end

     0   :  { %s2027_s0 = inlined_call_operand.vmem [shape: f32[1,9,32], index: 0, kind: input, shape index: {}]   ;;  %s2028_s1 = inlined_call_operand.<no memory space> [shape: f32[1,1], index: 1, kind: input, shape index: {}]   ;;  %s2029_s2 = inlined_call_operand.hbm [shape: bf16[2,32,256], index: 2, kind: input, shape index: {}]   ;;  %s2030_s3 = inlined_call_operand.hbm [shape: bf16[2,32,256], index: 3, kind: input, shape index: {}]   ;;  %s2031_s4 = inlined_call_operand.hbm [shape: bf16[2,32,256], index: 4, kind: input, shape index: {}]   ;;  %s2032_s5 = inlined_call_operand.hbm [shape: bf16[2,32,256], index: 5, kind: input, shape index: {}]   ;;  %s2033_s6 = inlined_call_operand.hbm [shape: bf16[2,32,256], index: 6, kind: input, shape index: {}]   ;;  %s2034_s7 = inlined_call_operand.hbm [shape: f32[2,1,256], index: 7, kind: output, shape index: {}]  }
   0x1   :  { %2049 = sst [smem:[#allocation24_spill]] %s2030_s3 }
   0x2   :  { %2050 = sst [smem:[#allocation25_spill]] %s2032_s5 }
   0x3   :  { %12 = sst [smem:[#allocation3]] %s2028_s1 }
   0x4   :  { %13 = vsyncpa [#allocation5], 0 }
   0x5   :  { %15 = vsyncpa [#allocation5 + $0x1], 0 }
   0x6   :  { %16 = vsyncpa [#allocation8], 0 }
   0x7   :  { %18 = vsyncpa [#allocation8 + $0x1], 0 }
   0x8   :  { %19 = vsyncpa [#allocation11], 0 }
   0x9   :  { %21 = vsyncpa [#allocation11 + $0x1], 0 }
   0xa   :  { %22 = vsyncpa [#allocation6], 0 }
   0xb   :  { %24 = vsyncpa [#allocation6 + $0x1], 0  ;;  %s1585_s26 = smov 0   ;;  %s1587_s27 = smov 0  }
   0xc   :  { %s1589_s28 = smov 0   ;;  %s1591_s29 = smov 0  }
   0xd   :  { %s1593_s30 = smov 0   ;;  %s1595_s8 = smov 0  }
   0xe LB: > { %2051 = sst [smem:[#allocation18_spill]] %s1505_s26  ;;  %s1616_s1 = sadd.s32 4294967295, %s1525_s8   ;;  %s1525_s8 = sphi %s1595_s8, %s30_s8   ;;  %s1521_s30 = sphi %s1593_s30, %s2082_s30   ;;  %s1517_s29 = sphi %s1591_s29, %s2081_s29   ;;  %s1513_s28 = sphi %s1589_s28, %s2085_s28   ;;  %s1509_s27 = sphi %s1587_s27, %s2084_s27   ;;  %s1505_s26 = sphi %s1585_s26, %s2083_s26  }
   0xf   : > { %2052 = sst [smem:[#allocation19_spill]] %s1521_s30  ;;  %s1143_s9 = sadd.s32 4294967294, %s1525_s8  }
  0x10   : > { %2053 = sst [smem:[#allocation20_spill]] %s1525_s8  ;;  %s42_s10 = sadd.s32 1, %s1521_s30 }
  0x11   : > { %s98_s11 = sadd.s32 1, %s1513_s28  ;;  %p44_p0 = scmp.ge.s32.totalorder %s42_s10, 2 }
  0x12   : > { %p105_p1 = scmp.ne.s32.totalorder %s1513_s28, %s1509_s27  ;;  %p106_p2 = scmp.eq.s32.totalorder %s1525_s8, 0 }
  0x13   : > { %p111_p3 = scmp.ne.s32.totalorder %s1509_s27, %s1505_s26  ;;  %s2087_s10 = smov (%p44_p0, %s42_s10), 0 }
  0x14   : > { %2054 = sst [smem:[#allocation21_spill]] %s2087_s10  ;;  %p1628_p4 = por %p106_p2, %p105_p1 }
  0x15   : > { %p112_p5 = scmp.eq.s32.totalorder %s1616_s1, 0  ;;  %s93_s13 = ssub.s32 %s1521_s30, %s2087_s10 }
  0x16   : > { %p247_p6 = scmp.eq.s32.totalorder %s1616_s1, 1  ;;  %p96_p7 = scmp.eq.s32.totalorder %s93_s13, 0 }
  0x17   : > { %p1636_p8 = por %p112_p5, %p111_p3  ;;  %p253_p10 = scmp.eq.s32.totalorder %s1143_s9, 1 }
  0x18   : > { %p1640_p9 = por %p247_p6, %p105_p1  ;;  %p1226_p13 = scmp.lt.s32.totalorder %s1525_s8, 2 }
  0x19   : > { %s2056_s14 = scalar_select %p1636_p8, 1, 0 }
  0x1a   : > { %s2057_s15 = scalar_select %p1640_p9, 1, 0 }
  0x1b   : > { %s1645_s16 = scalar_select %p96_p7, %s1513_s28, %s98_s11  }
  0x1c   : > { %p1647_p11 = por %p253_p10, %p111_p3  ;;  %s2035_s18 = sand.u32 1, %s1513_s28  }
  0x1d   : > { %2058 = sst [smem:[#allocation22_spill]] %s1645_s16  ;;  %s1656_s19 = sshll.u32 %s2035_s18, 5 }
  0x1e   : > { %s2059_s17 = scalar_select %p1647_p11, 1, 0 }
  0x1f   : > { %s1659_s20 = sshll.u32 %s1521_s30, 9  ;;  %p1663_p0 = pnand %p1226_p13, %p1628_p4 }
  0x20   : > { %2060 = sst [smem:[#allocation23_spill]] %s2059_s17  ;;  %s2038_s22 = sand.u32 1, %s1525_s8  }
  0x21   : > { %s2062_s3 = sld [smem:[#allocation24_spill]]  ;;  %s312_s9 = scalar_lea.vmem [#allocation7], %s1656_s19 }
  0x22   : > { %s322_s11 = sshll.u32 %s312_s9, 4  ;;  %s1681_s12 = scalar_lea.sflag [#allocation8], %s2038_s22  ;;  %s1676_s11 = int_to_ptr.vmem [resolvable:$true] %s322_s11 }
  0x23   : > { %p1687_p4 = pneg %p1663_p0 }
  0x27   : > { %s1672_s25 = scalar_lea.hbm %s2062_s3, %s1659_s20  ;;  %s1290_s18 = scalar_lea.hbm %s2062_s3, 1024 }
  0x28   : > { %s1285_s13 = scalar_lea.hbm %s1672_s25, 512  ;;  %p1291_p7 = scmp.lt.u32.totalorder %s1672_s25, %s2062_s3 }
  0x29   : > { %p1286_p3 = scmp.ne.s32.totalorder %s1672_s25, %s1285_s13  ;;  %p1292_p10 = scmp.lt.u32.totalorder %s1290_s18, %s1285_s13 }
  0x2a   : > { %p1294_p12 = scmp.lt.u32.totalorder %s1285_s13, %s1672_s25 }
  0x2b   : > { %p1288_p5 = pnand %p1687_p4, %p1286_p3  ;;  %p1293_p13 = por %p1292_p10, %p1291_p7 }
  0x2d   : > { %p1289_p6 = pneg %p1288_p5  ;;  %p1295_p1 = por %p1294_p12, %p1293_p13 }
  0x2f   : > { %p1296_p2 = pnand %p1295_p1, %p1289_p6 }
  0x31   : > { %1299 = shalt.err (!%p1296_p2)
}
  0x32   : > { %s1300_s22 = scalar_lea.vmem %s1676_s11, 512  ;;  %s1527_s24 = smov [#allocation7]  }
  0x33   : > { %p1301_p3 = scmp.ne.s32.totalorder %s1676_s11, %s1300_s22  ;;  %s1305_s9 = sshll.u32 %s1527_s24, 4  ;;  %s1306_s9 = int_to_ptr.vmem [resolvable:$false] %s1305_s9 }
  0x34   : > { %s1307_s30 = scalar_lea.vmem %s1306_s9, 1024  ;;  %p1308_p9 = scmp.lt.s32.totalorder %s1676_s11, %s1306_s9 }
  0x35   : > { %p1303_p5 = pnand %p1301_p3, %p1687_p4  ;;  %p1309_p8 = scmp.lt.s32.totalorder %s1307_s30, %s1300_s22 }
  0x37   : > { %p1304_p11 = pneg %p1303_p5  ;;  %p1310_p7 = por %p1309_p8, %p1308_p9 }
  0x39   : > { %p1311_p10 = pnand %p1310_p7, %p1304_p11 }
  0x3b   : > { %1314 = shalt.err (!%p1311_p10)
}
  0x3c   : > { %s2041_s10 = smov 128   ;;  %s2043_s18 = smov 8  }
  0x3d   : > { %1212 = dma.hbm_to_vmem [thread:$0]  (!%p1663_p0), %s1672_s25, 512, %s1676_s11, %s1681_s12, %s2041_s10, %s2041_s10, %s2043_s18  }
  0x3e   : > { %p2064_p8 = scmp.lt.s32.totalorder %s1525_s8, 3  ;;  %p2065_p9 = scmp.ge.s32.totalorder %s1525_s8, 1 }
  0x3f   : > { %s2067_s5 = sld [smem:[#allocation25_spill]]  ;;  %s360_s30 = scalar_lea.vmem [#allocation10], %s1656_s19 }
  0x40   : > { %p1718_p11 = pnand %p2065_p9, %p2064_p8  ;;  %s370_s3 = sshll.u32 %s360_s30, 4  ;;  %s1729_s3 = int_to_ptr.vmem [resolvable:$true] %s370_s3 }
  0x41   : > { %s2068_s25 = sand.u32 1, %s1525_s8  }
  0x42   : > { %s2066_s22 = scalar_select %p1718_p11, 1, 0 }
  0x43   : > { %s1733_s11 = scalar_lea.sflag [#allocation11], %s2068_s25 }
  0x45   : > { %s1726_s9 = scalar_lea.hbm %s2067_s5, %s1659_s20  ;;  %s1320_s24 = scalar_lea.hbm %s2067_s5, 1024 }
  0x46   : > { %s1315_s10 = scalar_lea.hbm %s1726_s9, 512  ;;  %p1321_p6 = scmp.lt.u32.totalorder %s1726_s9, %s2067_s5 }
  0x47   : > { %p1316_p12 = scmp.ne.s32.totalorder %s1726_s9, %s1315_s10  ;;  %p1322_p13 = scmp.lt.u32.totalorder %s1320_s24, %s1315_s10 }
  0x48   : > { %p1324_p5 = scmp.lt.u32.totalorder %s1315_s10, %s1726_s9 }
  0x49   : > { %p1318_p1 = pnand %p1316_p12, %p1687_p4  ;;  %p1323_p3 = por %p1322_p13, %p1321_p6 }
  0x4b   : > { %p1319_p2 = pneg %p1318_p1  ;;  %p1325_p7 = por %p1324_p5, %p1323_p3 }
  0x4d   : > { %p1326_p10 = pnand %p1325_p7, %p1319_p2 }
  0x4f   : > { %1329 = shalt.err (!%p1326_p10)
}
  0x50   : > { %s1330_s30 = scalar_lea.vmem %s1729_s3, 512  ;;  %s1530_s18 = smov [#allocation10]  }
  0x51   : > { %p1331_p8 = scmp.ne.s32.totalorder %s1729_s3, %s1330_s30  ;;  %s1335_s25 = sshll.u32 %s1530_s18, 4  ;;  %s1336_s25 = int_to_ptr.vmem [resolvable:$false] %s1335_s25 }
  0x52   : > { %s1337_s16 = scalar_lea.vmem %s1336_s25, 1024  ;;  %p1338_p1 = scmp.lt.s32.totalorder %s1729_s3, %s1336_s25 }
  0x53   : > { %p1333_p9 = pnand %p1331_p8, %p1687_p4  ;;  %p1339_p11 = scmp.lt.s32.totalorder %s1337_s16, %s1330_s30 }
  0x55   : > { %p1334_p12 = pneg %p1333_p9  ;;  %p1340_p6 = por %p1339_p11, %p1338_p1 }
  0x57   : > { %p1341_p13 = pnand %p1340_p6, %p1334_p12 }
  0x59   : > { %1344 = shalt.err (!%p1341_p13)
}
  0x5a   : > { %s2069_s17 = smov 8   ;;  %s2070_s10 = smov 128  }
  0x5b   : > { %1218 = dma.hbm_to_vmem [thread:$0]  (!%p1663_p0), %s1726_s9, 512, %s1729_s3, %s1733_s11, %s2070_s10, %s2070_s10, %s2069_s17  }
  0x5c   : > { %s1764_s30 = scalar_lea.hbm %s2029_s2, %s1659_s20  ;;  %s288_s18 = scalar_lea.vmem [#allocation4], %s1656_s19 }
  0x5d   : > { %s298_s25 = sshll.u32 %s288_s18, 4  ;;  %s2071_s16 = sand.u32 1, %s1513_s28   ;;  %s1767_s25 = int_to_ptr.vmem [resolvable:$true] %s298_s25 }
  0x5e   : > { %s1771_s5 = scalar_lea.sflag [#allocation5], %s2071_s16  ;;  %s1345_s8 = scalar_lea.hbm %s1764_s30, 512 }
  0x5f   : > { %p1346_p11 = scmp.ne.s32.totalorder %s1764_s30, %s1345_s8  ;;  %s1350_s13 = scalar_lea.hbm %s2029_s2, 1024 }
  0x60   : > { %p1351_p5 = scmp.lt.u32.totalorder %s1764_s30, %s2029_s2  ;;  %p1352_p7 = scmp.lt.u32.totalorder %s1350_s13, %s1345_s8 }
  0x61   : > { %p1348_p2 = pnand %p1346_p11, %p1687_p4  ;;  %p1354_p8 = scmp.lt.u32.totalorder %s1345_s8, %s1764_s30 }
  0x62   : > { %p1353_p10 = por %p1352_p7, %p1351_p5 }
  0x63   : > { %p1349_p3 = pneg %p1348_p2 }
  0x64   : > { %p1355_p9 = por %p1354_p8, %p1353_p10 }
  0x66   : > { %p1356_p12 = pnand %p1355_p9, %p1349_p3 }
  0x68   : > { %1359 = shalt.err (!%p1356_p12)
}
  0x69   : > { %s1360_s18 = scalar_lea.vmem %s1767_s25, 512  ;;  %s1531_s16 = smov [#allocation4]  }
  0x6a   : > { %p1361_p1 = scmp.ne.s32.totalorder %s1767_s25, %s1360_s18  ;;  %s1365_s3 = sshll.u32 %s1531_s16, 4  ;;  %s1366_s3 = int_to_ptr.vmem [resolvable:$false] %s1365_s3 }
  0x6b   : > { %s1367_s26 = scalar_lea.vmem %s1366_s3, 1024  ;;  %p1368_p11 = scmp.lt.s32.totalorder %s1767_s25, %s1366_s3 }
  0x6c   : > { %p1363_p6 = pnand %p1361_p1, %p1687_p4  ;;  %p1369_p2 = scmp.lt.s32.totalorder %s1367_s26, %s1360_s18 }
  0x6e   : > { %p1364_p13 = pneg %p1363_p6  ;;  %p1370_p5 = por %p1369_p2, %p1368_p11 }
  0x70   : > { %p1371_p7 = pnand %p1370_p5, %p1364_p13 }
  0x72   : > { %1374 = shalt.err (!%p1371_p7)
}
  0x73   : > { %1209 = dma.hbm_to_vmem [thread:$0]  (!%p1663_p0), %s1764_s30, 512, %s1767_s25, %s1771_s5, %s2070_s10, %s2070_s10, %s2069_s17  }
  0x74   : > { %s1802_s13 = scalar_lea.hbm %s2031_s4, %s1659_s20  ;;  %s336_s24 = scalar_lea.vmem [#allocation9], %s1656_s19 }
  0x75   : > { %s346_s18 = sshll.u32 %s336_s24, 4  ;;  %s1375_s16 = scalar_lea.hbm %s1802_s13, 512  ;;  %s1805_s18 = int_to_ptr.vmem [resolvable:$true] %s346_s18 }
  0x76   : > { %p1376_p3 = scmp.ne.s32.totalorder %s1802_s13, %s1375_s16  ;;  %s1380_s30 = scalar_lea.hbm %s2031_s4, 1024 }
  0x77   : > { %p1381_p9 = scmp.lt.u32.totalorder %s1802_s13, %s2031_s4  ;;  %p1382_p12 = scmp.lt.u32.totalorder %s1380_s30, %s1375_s16 }
  0x78   : > { %p1378_p10 = pnand %p1376_p3, %p1687_p4  ;;  %p1384_p6 = scmp.lt.u32.totalorder %s1375_s16, %s1802_s13 }
  0x79   : > { %p1383_p1 = por %p1382_p12, %p1381_p9 }
  0x7a   : > { %p1379_p8 = pneg %p1378_p10 }
  0x7b   : > { %p1385_p13 = por %p1384_p6, %p1383_p1 }
  0x7d   : > { %p1386_p11 = pnand %p1385_p13, %p1379_p8 }
  0x7f   : > { %1389 = shalt.err (!%p1386_p11)
}
  0x80   : > { %s1390_s8 = scalar_lea.vmem %s1805_s18, 512  ;;  %s1532_s9 = smov [#allocation9]  }
  0x81   : > { %p1391_p2 = scmp.ne.s32.totalorder %s1805_s18, %s1390_s8  ;;  %s1395_s24 = sshll.u32 %s1532_s9, 4  ;;  %s1396_s24 = int_to_ptr.vmem [resolvable:$false] %s1395_s24 }
  0x82   : > { %s1397_s3 = scalar_lea.vmem %s1396_s24, 1024  ;;  %p1398_p3 = scmp.lt.s32.totalorder %s1805_s18, %s1396_s24 }
  0x83   : > { %p1393_p5 = pnand %p1391_p2, %p1687_p4  ;;  %p1399_p10 = scmp.lt.s32.totalorder %s1397_s3, %s1390_s8 }
  0x85   : > { %p1394_p7 = pneg %p1393_p5  ;;  %p1400_p9 = por %p1399_p10, %p1398_p3 }
  0x87   : > { %p1401_p12 = pnand %p1400_p9, %p1394_p7 }
  0x89   : > { %1404 = shalt.err (!%p1401_p12)
}
  0x8a   : > { %1215 = dma.hbm_to_vmem [thread:$0]  (!%p1663_p0), %s1802_s13, 512, %s1805_s18, %s1681_s12, %s2070_s10, %s2070_s10, %s2069_s17  }
  0x8b   : > { %s1836_s30 = scalar_lea.hbm %s2033_s6, %s1659_s20  ;;  %s384_s25 = scalar_lea.vmem [#allocation12], %s1656_s19 }
  0x8c   : > { %s394_s26 = sshll.u32 %s384_s25, 4  ;;  %s1405_s8 = scalar_lea.hbm %s1836_s30, 512  ;;  %s1839_s26 = int_to_ptr.vmem [resolvable:$true] %s394_s26 }
  0x8d   : > { %p1406_p8 = scmp.ne.s32.totalorder %s1836_s30, %s1405_s8  ;;  %s1410_s13 = scalar_lea.hbm %s2033_s6, 1024 }
  0x8e   : > { %p1411_p13 = scmp.lt.u32.totalorder %s1836_s30, %s2033_s6  ;;  %p1412_p11 = scmp.lt.u32.totalorder %s1410_s13, %s1405_s8 }
  0x8f   : > { %p1408_p1 = pnand %p1406_p8, %p1687_p4  ;;  %p1414_p5 = scmp.lt.u32.totalorder %s1405_s8, %s1836_s30 }
  0x90   : > { %p1413_p2 = por %p1412_p11, %p1411_p13 }
  0x91   : > { %p1409_p6 = pneg %p1408_p1 }
  0x92   : > { %p1415_p7 = por %p1414_p5, %p1413_p2 }
  0x94   : > { %p1416_p3 = pnand %p1415_p7, %p1409_p6 }
  0x96   : > { %1419 = shalt.err (!%p1416_p3)
}
  0x97   : > { %s1420_s19 = scalar_lea.vmem %s1839_s26, 512  ;;  %s1533_s24 = smov [#allocation12]  }
  0x98   : > { %p1421_p10 = scmp.ne.s32.totalorder %s1839_s26, %s1420_s19  ;;  %s1425_s3 = sshll.u32 %s1533_s24, 4  ;;  %s1426_s3 = int_to_ptr.vmem [resolvable:$false] %s1425_s3 }
  0x99   : > { %s1427_s16 = scalar_lea.vmem %s1426_s3, 1024  ;;  %p1428_p8 = scmp.lt.s32.totalorder %s1839_s26, %s1426_s3 }
  0x9a   : > { %p1423_p9 = pnand %p1421_p10, %p1687_p4  ;;  %p1429_p1 = scmp.lt.s32.totalorder %s1427_s16, %s1420_s19 }
  0x9c   : > { %p1424_p12 = pneg %p1423_p9  ;;  %p1430_p13 = por %p1429_p1, %p1428_p8 }
  0x9e   : > { %p1431_p11 = pnand %p1430_p13, %p1424_p12 }
  0xa0   : > { %1434 = shalt.err (!%p1431_p11)
}
  0xa1   : > { %1221 = dma.hbm_to_vmem [thread:$0]  (!%p1663_p0), %s1836_s30, 512, %s1839_s26, %s1733_s11, %s2070_s10, %s2070_s10, %s2069_s17  }
  0xa2   : > { %p2072_p4 = scmp.ne.s32.totalorder %s2066_s22, 0 }
  0xa3   : > { %s1869_s23 = sand.u32 (!%p2072_p4), 1, %s1509_s27   ;;  %p2073_p6 = scmp.ne.s32.totalorder (!%p2072_p4), %s2056_s14, 0 }
  0xa4   : > { %406 = sbr.rel (%p2072_p4) target bundleno = 937 (0x3a9), region = 48  ;;  %s1872_s5 = sshll.u32 (!%p2072_p4), %s1869_s23, 5 }
  0xa5   : > { %s409_s21 = scalar_lea.sflag (!%p2072_p4), [#allocation5], %s1869_s23  ;;  %s1876_s25 = scalar_lea.vmem (!%p2072_p4), [#allocation4], %s1872_s5 }
  0xab   : > { %1488 = dma.done.wait (%p2073_p6), %s409_s21, 512  }
  0xac   : > { %1490 = vsyncadd (%p2073_p6), %s409_s21, 4294966784  ;;  %s417_s22 = sand.u32 1, %s1616_s1   ;;  %s1884_s17 = scalar_lea.vmem [#allocation7], %s1872_s5 }
  0xad   : > { %s418_s11 = scalar_lea.sflag [#allocation8], %s417_s22 }
  0xae   : > { %1492 = dma.done.wait (%p2073_p6), %s418_s11, 1024  }
  0xaf   : > { %1494 = vsyncadd (%p2073_p6), %s418_s11, 4294966272  ;;  %s1891_s10 = scalar_lea.vmem [#allocation9], %s1872_s5  ;;  %s436_s30 = scalar_lea.sflag [#allocation11], %s417_s22 }
  0xb0   : > { %s1894_s26 = scalar_lea.vmem [#allocation10], %s1872_s5 }
  0xb1   : > { %1496 = dma.done.wait (%p2073_p6), %s436_s30, 1024  }
  0xb2   : > { %1498 = vsyncadd (%p2073_p6), %s436_s30, 4294966272  ;;  %v1534_v0 = vmov 0.0   ;;  %v514_v1 = vld [vmem:[%s1876_s25] sm:$0xff]  ;;  %v515_v2 = vld [vmem:[%s1876_s25 + $0x8] sm:$0xff]  ;;  %s1914_s1 = scalar_lea.vmem [#allocation12], %s1872_s5  ;;  %vm608_vm0 = vcmask 261120  }
  0xb3   : > { %679 = vmatprep.mubr.f32.mxu0 %v1534_v0  ;;  %701 = vst [vmem:[#allocation2 + $0x28] sm:$0x1] %v1534_v0  ;;  %702 = vst [vmem:[#allocation2 + $0x30] sm:$0x1] %v1534_v0  ;;  %685 = vmatprep.mubr.f32.mxu1 %v1534_v0  ;;  %v526_v3 = vld [vmem:[%s1884_s17] sm:$0xff]  ;;  %v519_v4 = vunpack.c.h.bf16 %v514_v1  ;;  %v521_v5 = vunpack.c.h.bf16 %v515_v2  ;;  %v527_v6 = vld [vmem:[%s1884_s17 + $0x8] sm:$0xff]  ;;  %v518_v10 = vunpack.c.l.bf16 %v514_v1  ;;  %v520_v17 = vunpack.c.l.bf16 %v515_v2 }
  0xb4   : > { %703 = vst [vmem:[#allocation2 + $0x38] sm:$0x1] %v1534_v0  ;;  %v531_v7 = vunpack.c.h.bf16 %v526_v3  ;;  %v538_v8 = vld [vmem:[%s1891_s10] sm:$0xff]  ;;  %v539_v9 = vld [vmem:[%s1891_s10 + $0x8] sm:$0xff]  ;;  %v533_v11 = vunpack.c.h.bf16 %v527_v6  ;;  %v530_v22 = vunpack.c.l.bf16 %v526_v3  ;;  %v532_v26 = vunpack.c.l.bf16 %v527_v6  ;;  %v1919_v31 = vld [vmem:[%s1876_s25 + $0x10] sm:$0xff]  ;;  %s1535_s13 = smov 96  }
  0xb5   : > { %v543_v12 = vunpack.c.h.bf16 %v538_v8  ;;  %v545_v13 = vunpack.c.h.bf16 %v539_v9  ;;  %v566_v14 = vld [vmem:[%s1894_s26] sm:$0xff]  ;;  %v567_v15 = vld [vmem:[%s1894_s26 + $0x8] sm:$0xff]  ;;  %v542_v28 = vunpack.c.l.bf16 %v538_v8  ;;  %v544_v29 = vunpack.c.l.bf16 %v539_v9  ;;  %v1922_v32 = vld [vmem:[%s1876_s25 + $0x18] sm:$0xff]  ;;  %s1536_s18 = smov 112   ;;  %s1537_s20 = smov 17  }
  0xb6   : > { %v578_v16 = vld [vmem:[%s1914_s1] sm:$0xff]  ;;  %v571_v18 = vunpack.c.h.bf16 %v566_v14  ;;  %v573_v19 = vunpack.c.h.bf16 %v567_v15  ;;  %v579_v20 = vld [vmem:[%s1914_s1 + $0x8] sm:$0xff]  ;;  %v570_v30 = vunpack.c.l.bf16 %v566_v14  ;;  %v572_v36 = vunpack.c.l.bf16 %v567_v15  ;;  %v528_v41 = vld [vmem:[%s1884_s17 + $0x10] sm:$0xff]  ;;  %s1538_s19 = smov 15   ;;  %s822_s24 = sld [smem:[#allocation3]] }
  0xb7   : > { %v583_v21 = vunpack.c.h.bf16 %v578_v16  ;;  %v551_v23 = vmul.f32 %v543_v12, %v531_v7  ;;  %v553_v24 = vmul.f32 %v545_v13, %v533_v11  ;;  %v585_v25 = vunpack.c.h.bf16 %v579_v20  ;;  %v529_v42 = vld [vmem:[%s1884_s17 + $0x18] sm:$0xff]  ;;  %v540_v43 = vld [vmem:[%s1891_s10 + $0x10] sm:$0xff]  ;;  %s1540_s3 = smov 16   ;;  %s1168_s16 = sshll.u32 %s1869_s23, 1 }
  0xb8   : > { %v550_v37 = vmul.f32 %v542_v28, %v530_v22  ;;  %v552_v38 = vmul.f32 %v544_v29, %v532_v26  ;;  %v582_v39 = vunpack.c.l.bf16 %v578_v16  ;;  %v584_v40 = vunpack.c.l.bf16 %v579_v20  ;;  %v541_v48 = vld [vmem:[%s1891_s10 + $0x18] sm:$0xff]  ;;  %v568_v49 = vld [vmem:[%s1894_s26 + $0x10] sm:$0xff]  ;;  %s1181_s5 = sshll.u32 %s1517_s29, 5  ;;  %s503_s21 = scalar_lea.vmem [#allocation13], %s1168_s16 }
  0xb9   : > { %v591_v27 = vmul.f32 %v583_v21, %v571_v18  ;;  %v559_v33 = vadd.f32 %v551_v23, %v519_v4  ;;  %v561_v34 = vadd.f32 %v553_v24, %v521_v5  ;;  %v593_v35 = vmul.f32 %v585_v25, %v573_v19  ;;  %v569_v54 = vld [vmem:[%s1894_s26 + $0x18] sm:$0xff]  ;;  %v580_v55 = vld [vmem:[%s1914_s1 + $0x10] sm:$0xff]  ;;  %s948_s25 = sshll.u32 %s503_s21, 4  ;;  %s1978_s17 = scalar_lea.hbm %s2034_s7, %s1181_s5  ;;  %s1980_s25 = int_to_ptr.vmem [resolvable:$true] %s948_s25 }
  0xba   : > { %v523_v46 = vunpack.c.h.bf16 %v1919_v31  ;;  %v525_v47 = vunpack.c.h.bf16 %v1922_v32  ;;  %v558_v50 = vadd.f32 %v550_v37, %v518_v10  ;;  %v560_v51 = vadd.f32 %v552_v38, %v520_v17  ;;  %v581_v56 = vld [vmem:[%s1914_s1 + $0x18] sm:$0xff]  ;;  %v706_v38 = vld [vmem:[#allocation2 + $0x28] sm:$0x1]  ;;  %s934_s29 = scalar_lea.sflag [#allocation6], %s1869_s23  ;;  %s1435_s10 = scalar_lea.vmem %s1980_s25, 32 }
  0xbb   : > { %v599_v44 = vadd.f32 %v591_v27, %v559_v33  ;;  %v601_v45 = vadd.f32 %v593_v35, %v561_v34  ;;  %v590_v52 = vmul.f32 %v582_v39, %v570_v30  ;;  %v592_v53 = vmul.f32 %v584_v40, %v572_v36  ;;  %v606_v34 = vld [vmem:[%s2027_s0] sm:$0xff]  ;;  %v607_v35 = vld [vmem:[%s2027_s0 + $0x8] sm:$0x1]  ;;  %v707_v39 = vld [vmem:[#allocation2 + $0x30] sm:$0x1]  ;;  %p1436_p0 = scmp.ne.s32.totalorder %s1980_s25, %s1435_s10  ;;  %p2074_p2 = scmp.ne.s32.totalorder %s2057_s15, 0 }
  0xbc   : > { %v535_v58 = vunpack.c.h.bf16 %v528_v41  ;;  %v537_v59 = vunpack.c.h.bf16 %v529_v42  ;;  %v547_v60 = vunpack.c.h.bf16 %v540_v43  ;;  %v549_v63 = vunpack.c.h.bf16 %v541_v48  ;;  %s1541_s30 = smov [#allocation13]  }
  0xbd   : > { %v1182_v57 = vpack.c.bf16 %v601_v45, %v599_v44  ;;  %v598_v61 = vadd.f32 %v590_v52, %v558_v50  ;;  %v600_v62 = vadd.f32 %v592_v53, %v560_v51  ;;  %v575_v1 = vunpack.c.h.bf16 %v568_v49  ;;  %v725_v51 = vld [vmem:[#allocation2 + $0x38] sm:$0x1]  ;;  %p1437_p5 = pnand %p1436_p0, %p2074_p2  ;;  %s1439_s26 = sshll.u32 %s1541_s30, 4  ;;  %s1440_s26 = int_to_ptr.vmem [resolvable:$false] %s1439_s26 }
  0xbe   : > { %v555_v2 = vmul.f32 %v547_v60, %v535_v58  ;;  %v577_v3 = vunpack.c.h.bf16 %v569_v54  ;;  %v587_v4 = vunpack.c.h.bf16 %v580_v55  ;;  %v589_v5 = vunpack.c.h.bf16 %v581_v56  ;;  %s1441_s1 = scalar_lea.vmem %s1440_s26, 64  ;;  %p1442_p3 = scmp.lt.s32.totalorder %s1980_s25, %s1440_s26 }
  0xbf   : > { %1183 = vmatprep.subr.bf16.mxu0 %v1182_v57  ;;  %1190 = vmatprep.subr.bf16.mxu1 %v1182_v57  ;;  %v1184_v6 = vpack.c.bf16 %v600_v62, %v598_v61  ;;  %v557_v7 = vmul.f32 %v549_v63, %v537_v59  ;;  %v522_v8 = vunpack.c.l.bf16 %v1919_v31  ;;  %v524_v9 = vunpack.c.l.bf16 %v1922_v32  ;;  %p1438_p7 = pneg %p1437_p5  ;;  %p1443_p10 = scmp.lt.s32.totalorder %s1441_s1, %s1435_s10 }
  0xc0   : > { %v563_v10 = vadd.f32 %v555_v2, %v523_v46  ;;  %v595_v11 = vmul.f32 %v587_v4, %v575_v1  ;;  %v597_v12 = vmul.f32 %v589_v5, %v577_v3  ;;  %v534_v13 = vunpack.c.l.bf16 %v528_v41 }
  0xc1   : > { %1185 = vmatpush1.bf16.msra.mxu0 %v1184_v6  ;;  %1192 = vmatpush1.bf16.msra.mxu1 %v1184_v6  ;;  %v565_v14 = vadd.f32 %v557_v7, %v525_v47  ;;  %v536_v15 = vunpack.c.l.bf16 %v529_v42  ;;  %v546_v16 = vunpack.c.l.bf16 %v540_v43  ;;  %v548_v17 = vunpack.c.l.bf16 %v541_v48  ;;  %p1444_p9 = por %p1443_p10, %p1442_p3 }
  0xc2   : > { %v603_v18 = vadd.f32 %v595_v11, %v563_v10  ;;  %v574_v19 = vunpack.c.l.bf16 %v568_v49  ;;  %v576_v20 = vunpack.c.l.bf16 %v569_v54  ;;  %v586_v21 = vunpack.c.l.bf16 %v580_v55 }
  0xc3   : > { %v605_v22 = vadd.f32 %v597_v12, %v565_v14  ;;  %v554_v23 = vmul.f32 %v546_v16, %v534_v13  ;;  %v556_v24 = vmul.f32 %v548_v17, %v536_v15  ;;  %v588_v25 = vunpack.c.l.bf16 %v581_v56  ;;  %p1445_p12 = pnand %p1444_p9, %p1438_p7 }
  0xc4   : > { %v594_v26 = vmul.f32 %v586_v21, %v574_v19  ;;  %v745_v36 = vrot.slane %v1534_v0, 6  ;;  %v762_v37 = vrot.slane %v1534_v0, 3  ;;  %v780_v54 = vrot.slane %v725_v51, 6 }
  0xc5   : > { %v1186_v27 = vpack.c.bf16 %v605_v22, %v603_v18  ;;  %v562_v28 = vadd.f32 %v554_v23, %v522_v8  ;;  %v564_v29 = vadd.f32 %v556_v24, %v524_v9  ;;  %v596_v30 = vmul.f32 %v588_v25, %v576_v20 }
  0xc6   : > { %750 = vrot.lane.b32.xlu0 %v745_v36, %s1535_s13  ;;  %763 = vrot.lane.b32.xlu1 %v762_v37, %s1536_s18  ;;  %vm734_vm1 = vcmask 916480   ;;  %vm752_vm2 = vcmask 785408   ;;  %v795_v22 = vlaneseq  ;;  %vm838_vm3 = vcmask 138240  }
  0xc7   : > { %1187 = vmatprep.subr.bf16.mxu0 %v1186_v27  ;;  %1191 = vmatprep.subr.bf16.mxu1 %v1186_v27  ;;  %v602_v31 = vadd.f32 %v594_v26, %v562_v28  ;;  %v604_v32 = vadd.f32 %v596_v30, %v564_v29  ;;  %vm874_vm6 = vcmask 121856   ;;  %vm925_vm9 = vcmask 130048  }
  0xc8   : > { %v796_v23 = vand.u32 127, %v795_v22  ;;  %vm930_vm10 = vcmp.lt.s32.totalorder %v795_v22, 256 }
  0xc9   : > { %v1188_v33 = vpack.c.bf16 %v604_v32, %v602_v31 }
  0xca   : > { %770 = vrot.lane.b32.xlu1 %v762_v37, %s1536_s18  ;;  %v797_v24 = vadd.s32 128, %v796_v23  ;;  %v802_v25 = vand.u32 15, %v796_v23 }
  0xcb   : > { %1189 = vmatpush1.bf16.msra.mxu0 %v1188_v33  ;;  %1193 = vmatpush1.bf16.msra.mxu1 %v1188_v33 }
  0xcc   : > { %v809_v26 = vand.u32 15, %v797_v24  ;;  %vm827_vm4 = vcmp.ge.s32.totalorder %v802_v25, 1  ;;  %vm860_vm7 = vcmp.le.s32.totalorder %v802_v25, 14 }
  0xce   : > { %1169 = vmatmul.mubr.msk.f32.vlgmr.msra.gmra.mrb[0].mxu0 %vm608_vm0, %v606_v34  ;;  %1170 = vmatmul.mubr.msk.f32.vlgmr.msra.gmra.mrb[0].mxu1 %vm608_vm0, %v607_v35  ;;  %vm828_vm5 = vcmp.ge.s32.totalorder %v809_v26, 1  ;;  %vm861_vm8 = vcmp.le.s32.totalorder %v809_v26, 14 }
 0x138   : > { %v751_v55 = vpop.permute.xlu0 %750  ;;  %v764_v56 = vpop.permute.xlu1 %763 }
 0x13c   : > { %v771_v59 = vpop.permute.xlu1 %770 }
 0x1a1   : > { %v681_v40 = vpop.f32.mrb[0].mxu0  ;;  %v687_v41 = vpop.f32.mrb[0].mxu1 }
 0x1a2   : > { %v710_v42 = vadd.f32 %v706_v38, %v687_v41  ;;  %v683_v43 = vpop.f32.mrb[1].mxu0  ;;  %v689_v44 = vpop.f32.mrb[1].mxu1  ;;  %v728_v46 = vrot.slane %v681_v40, 3  ;;  %v743_v47 = vrot.slane %v681_v40, 6 }
 0x1a3   : > { %v711_v45 = vadd.f32 %v707_v39, %v689_v44  ;;  %v729_v49 = vrot.slane %v683_v43, 3  ;;  %v744_v52 = vrot.slane %v683_v43, 6 }
 0x1a4   : > { %714 = vst [vmem:[#allocation2 + $0x28] sm:$0x1] %v710_v42  ;;  %730 = vrot.lane.b32.xlu0 %v728_v46, %s1536_s18  ;;  %v823_v46 = vstv %s822_s24 }
 0x1a5   : > { %715 = vst [vmem:[#allocation2 + $0x30] sm:$0x1] %v711_v45 }
 0x1a8   : > { %746 = vrot.lane.b32.xlu0 %v743_v47, %s1535_s13 }
 0x1ab   : > { %v723_v0 = vld [vmem:[#allocation2 + $0x28] sm:$0x1] }
 0x1ac   : > { %v778_v48 = vrot.slane %v723_v0, 6  ;;  %v724_v50 = vld [vmem:[#allocation2 + $0x30] sm:$0x1]  ;;  %732 = vrot.lane.b32.xlu0 %v729_v49, %s1536_s18  ;;  %v1539_v0 = vmov 1966171168  }
 0x1ad   : > { %v779_v53 = vrot.slane %v724_v50, 6 }
 0x1ae   : > { %781 = vrot.lane.b32.xlu1 %v778_v48, %s1535_s13  ;;  %v901_v48 = vunpack.c.l.s4 %v1539_v0 }
 0x1b0   : > { %783 = vrot.lane.b32.xlu0 %v779_v53, %s1535_s13  ;;  %v902_v53 = vunpack.c.0.s8 %v901_v48 }
 0x1b2   : > { %748 = vrot.lane.b32.xlu1 %v744_v52, %s1535_s13 }
 0x1b6   : > { %785 = vrot.lane.b32.xlu1 %v780_v54, %s1535_s13  ;;  %v904_v54 = vshrl.u32 %v795_v22, 7 }
 0x216   : > { %v731_v57 = vpop.permute.xlu0 %730 }
 0x217   : > { %v765_v58 = vsel %vm734_vm1, %v764_v56, %v731_v57 }
 0x21a   : > { %v747_v60 = vpop.permute.xlu0 %746 }
 0x21b   : > { %v1955_v61 = vadd.f32 %v747_v60, %v731_v57  ;;  %v768_v62 = vadd.f32 %v765_v58, %v747_v60 }
 0x21d   : > { %832 = vrot.lane.b32.xlu0 %v768_v62, %s1537_s20  ;;  %v824_v49 = vadd.f32 %v823_v46, %v1955_v61 }
 0x21e   : > { %v733_v1 = vpop.permute.xlu0 %732 }
 0x21f   : > { %v735_v2 = vsel %vm734_vm1, %v731_v57, %v733_v1  ;;  %v741_v5 = vadd.f32 %v733_v1, %v683_v43  ;;  %v772_v9 = vsel %vm734_vm1, %v733_v1, %v771_v59 }
 0x220   : > { %v782_v63 = vpop.permute.xlu1 %781  ;;  %v740_v4 = vadd.f32 %v735_v2, %v681_v40  ;;  %v774_v15 = vadd.f32 %v772_v9, %v683_v43 }
 0x221   : > { %v792_v14 = vadd.f32 %v782_v63, %v731_v57 }
 0x222   : > { %v784_v6 = vpop.permute.xlu0 %783 }
 0x223   : > { %v787_v10 = vsel %vm752_vm2, %v782_v63, %v784_v6  ;;  %v865_v20 = vrot.slane %v792_v14, 2  ;;  %v905_v63 = vsub.s32 %v902_v53, %v904_v54 }
 0x224   : > { %v749_v3 = vpop.permute.xlu1 %748  ;;  %v793_v11 = vadd.f32 %v787_v10, %v740_v4 }
 0x225   : > { %v753_v7 = vsel %vm752_vm2, %v747_v60, %v749_v3  ;;  %v754_v8 = vsel %vm752_vm2, %v749_v3, %v751_v55 }
 0x226   : > { %v760_v12 = vadd.f32 %v754_v8, %v741_v5  ;;  %v759_v13 = vadd.f32 %v753_v7, %v740_v4  ;;  %v866_v19 = vrot.slane %v793_v11, 2 }
 0x228   : > { %v786_v16 = vpop.permute.xlu1 %785  ;;  %836 = vrot.lane.b32.xlu0 %v760_v12, %s1537_s20  ;;  %834 = vrot.lane.b32.xlu1 %v759_v13, %s1537_s20  ;;  %v826_v51 = vadd.f32 %v823_v46, %v760_v12  ;;  %v825_v52 = vadd.f32 %v823_v46, %v759_v13 }
 0x229   : > { %v788_v17 = vsel %vm752_vm2, %v784_v6, %v786_v16 }
 0x22a   : > { %v794_v18 = vadd.f32 %v788_v17, %v774_v15 }
 0x22c   : > { %868 = vrot.lane.b32.xlu1 %v865_v20, %s1538_s19  ;;  %870 = vrot.lane.b32.xlu0 %v866_v19, %s1538_s19  ;;  %v867_v21 = vrot.slane %v794_v18, 2 }
 0x230   : > { %872 = vrot.lane.b32.xlu1 %v867_v21, %s1538_s19 }
 0x28f   : > { %v833_v27 = vpop.permute.xlu0 %832 }
 0x29a   : > { %v837_v28 = vpop.permute.xlu0 %836  ;;  %v835_v29 = vpop.permute.xlu1 %834 }
 0x29b   : > { %v839_v30 = vsel %vm838_vm3, %v833_v27, %v835_v29  ;;  %v840_v31 = vsel %vm838_vm3, %v835_v29, %v837_v28 }
 0x29c   : > { %v843_v32 = vsel %vm827_vm4, %v839_v30, 0.0  ;;  %v844_v33 = vsel %vm828_vm5, %v840_v31, 0.0 }
 0x29d   : > { %v847_v34 = vrot.slane %v843_v32, 7  ;;  %v848_v35 = vrot.slane %v844_v33, 7 }
 0x29e   : > { %v869_v36 = vpop.permute.xlu1 %868  ;;  %v871_v37 = vpop.permute.xlu0 %870 }
 0x29f   : > { %v875_v38 = vsel %vm874_vm6, %v869_v36, %v871_v37  ;;  %849 = vrot.lane.b32.xlu0 %v847_v34, %s1536_s18  ;;  %851 = vrot.lane.b32.xlu1 %v848_v35, %s1536_s18 }
 0x2a0   : > { %v879_v39 = vsel %vm860_vm7, %v875_v38, 0.0 }
 0x2a1   : > { %v883_v40 = vrot.slane %v879_v39, 7 }
 0x2a2   : > { %v873_v41 = vpop.permute.xlu1 %872 }
 0x2a3   : > { %v876_v42 = vsel %vm874_vm6, %v871_v37, %v873_v41  ;;  %885 = vrot.lane.b32.xlu0 %v883_v40, %s1536_s18 }
 0x2a4   : > { %v880_v43 = vsel %vm861_vm8, %v876_v42, 0.0 }
 0x2a5   : > { %v884_v44 = vrot.slane %v880_v43, 7 }
 0x2a7   : > { %887 = vrot.lane.b32.xlu1 %v884_v44, %s1536_s18 }
 0x311   : > { %v850_v45 = vpop.permute.xlu0 %849  ;;  %v852_v47 = vpop.permute.xlu1 %851 }
 0x312   : > { %v853_v50 = vsel %vm734_vm1, %v850_v45, %v852_v47  ;;  %v859_v56 = vadd.f32 %v852_v47, %v826_v51  ;;  %v857_v57 = vadd.f32 %v850_v45, %v824_v49 }
 0x313   : > { %v858_v58 = vadd.f32 %v853_v50, %v825_v52 }
 0x315   : > { %v886_v55 = vpop.permute.xlu0 %885 }
 0x316   : > { %v893_v62 = vadd.f32 %v886_v55, %v857_v57 }
 0x319   : > { %v888_v59 = vpop.permute.xlu1 %887 }
 0x31a   : > { %v889_v60 = vsel %vm734_vm1, %v886_v55, %v888_v59  ;;  %v895_v61 = vadd.f32 %v888_v59, %v859_v56 }
 0x31b   : > { %v894_v1 = vadd.f32 %v889_v60, %v858_v58 }
 0x31c   : > { %v913_v4 = vrot.slane %v895_v61, %v905_v63 }
 0x31d   : > { %v899_v2 = vcombine.low %v893_v62, %v894_v1 }
 0x31f   : > { %v906_v3 = vrot.slane %v899_v2, %v905_v63 }
 0x321   : > { %v914_v5 = vcombine.high %v906_v3, %v913_v4 }
 0x323   : > { %v921_v6 = vrot.slane %v914_v5, %v905_v63 }
 0x325   : > { %922 = vrot.lane.b32.xlu0 %v921_v6, %s1540_s3 }
 0x397   : > { %v923_v7 = vpop.permute.xlu0 %922 }
 0x398   : > { %v924_v8 = vrot.slane %v923_v7, 1 }
 0x39a   : > { %v926_v9 = vsel %vm925_vm9, %v923_v7, %v924_v8 }
 0x39b   : > { %932 = vst.msk [vmem:[%s503_s21] sm:$0x3] %vm930_vm10, %v926_v9 }
 0x39c   : > { %1448 = shalt.err (!%p1445_p12)
}
 0x39d   : > { %s1449_s23 = scalar_lea.hbm %s1978_s17, 32  ;;  %s1453_s9 = scalar_lea.hbm %s2034_s7, 64 }
 0x39e   : > { %p1450_p8 = scmp.ne.s32.totalorder %s1978_s17, %s1449_s23  ;;  %p1454_p11 = scmp.lt.u32.totalorder %s1978_s17, %s2034_s7 }
 0x39f   : > { %p1455_p4 = scmp.lt.u32.totalorder %s1453_s9, %s1449_s23  ;;  %p1457_p0 = scmp.lt.u32.totalorder %s1449_s23, %s1978_s17 }
 0x3a0   : > { %p1451_p1 = pnand %p1450_p8, %p2074_p2 }
 0x3a1   : > { %p1456_p6 = por %p1455_p4, %p1454_p11 }
 0x3a2   : > { %p1452_p13 = pneg %p1451_p1 }
 0x3a3   : > { %p1458_p5 = por %p1457_p0, %p1456_p6 }
 0x3a5   : > { %p1459_p7 = pnand %p1458_p5, %p1452_p13 }
 0x3a7   : > { %1462 = shalt.err (!%p1459_p7)
}
 0x3a8   : > { %1204 = dma.vmem_to_hbm [thread:$0]  (%p2074_p2), %s1980_s25, 32, %s1978_s17, %s934_s29  }
 0x3a9 PF: > { %s2075_s18 = sld [smem:[#allocation18_spill]]  ;;  %s2076_s20 = sld [smem:[#allocation23_spill]] }
 0x3aa   : > { %s2077_s19 = sld [smem:[#allocation20_spill]] }
 0x3af   : > { %s960_s24 = sand.u32 1, %s2075_s18   ;;  %p2078_p3 = scmp.ne.s32.totalorder %s2076_s20, 0 }
 0x3b0   : > { %p2079_p10 = scmp.ge.s32.totalorder %s2077_s19, 2  ;;  %s961_s3 = scalar_lea.sflag [#allocation6], %s960_s24 }
 0x3b2   : > { %p1223_p9 = pnand %p2079_p10, %p2078_p3 }
 0x3b4   : > { %1500 = dma.done.wait (!%p1223_p9), %s961_s3, 32  }
 0x3b5   : > { %1502 = vsyncadd (!%p1223_p9), %s961_s3, 4294967264  ;;  %s30_s8 = sadd.s32 1, %s2077_s19   ;;  %s2080_s15 = sld [smem:[#allocation22_spill]] }
 0x3b6   : > { %p27_p12 = scmp.ge.s32.totalorder %s30_s8, 4   ;;  %s2081_s29 = sld [smem:[#allocation19_spill]] }
 0x3b7   : > { %s2082_s30 = sld [smem:[#allocation21_spill]]  ;;  %s2083_s26 = smov %s1509_s27 }
 0x3b8   : > { %s2084_s27 = smov %s1513_s28  ;;  %29 = sbr.rel (!%p27_p12) target bundleno = 14 (0xe), region = 152 }
 0x3bb   : > { %s2085_s28 = smov %s2080_s15 }
 0x3bf   :  { %966 = vsyncpa [#allocation5], 1 }
 0x3c0   :  { %968 = vsyncpa [#allocation5 + $0x1], 1 }
 0x3c1   :  { %969 = vsyncpa [#allocation8], 1 }
 0x3c2   :  { %971 = vsyncpa [#allocation8 + $0x1], 1 }
 0x3c3   :  { %972 = vsyncpa [#allocation11], 1 }
 0x3c4   :  { %974 = vsyncpa [#allocation11 + $0x1], 1 }
 0x3c5   :  { %975 = vsyncpa [#allocation6], 1 }
 0x3c6   :  { %977 = vsyncpa [#allocation6 + $0x1], 1 }

</bundles_post_ra>
